<compile_context>
chip_gen: v6e
topology: v6e:2x2x1
jax: 0.10.0
libtpu: 0.0.40
codegen_flags: <defaults>
</compile_context>

<pallas_src>
import functools

import jax
import jax.numpy as jnp
from jax.experimental import pallas as pl
from jax.experimental.pallas import tpu as pltpu


# ----------------------------- Pallas kernels ------------------------------------------------

def _conv_matmul_kernel(x_ref, w_ref, z_ref, *, apply_relu):
    # ReLU applied once per input element (no duplication); relu(0)=0 so it commutes with the
    # zero rows used for M padding and with the overlap-add done later.
    x = x_ref[...]
    if apply_relu:
        x = jnp.maximum(x, 0)
    z_ref[...] = jnp.dot(x, w_ref[...], preferred_element_type=jnp.float32)


def _bn_stats_kernel(y_ref, sum_ref, sq_ref):
    # Accumulate per-lane-column sum and sum-of-squares across the M grid (resident outputs).
    @pl.when(pl.program_id(0) == 0)
    def _():
        sum_ref[...] = jnp.zeros_like(sum_ref)
        sq_ref[...] = jnp.zeros_like(sq_ref)

    y = y_ref[...]
    sum_ref[...] += jnp.sum(y, axis=0, keepdims=True)
    sq_ref[...] += jnp.sum(y * y, axis=0, keepdims=True)


def _scale_shift_kernel(y_ref, scale_ref, shift_ref, o_ref):
    # Fused BN epilogue (or bias add for is_last): one FMA pass, lane-dense.
    o_ref[...] = y_ref[...] * scale_ref[...] + shift_ref[...]


# ----------------------------- wrapper --------------------------------------------------------

def basic_dec_block(x, w_t, bias, gamma, beta, kernel_size=4, stride=2, padding=1,
                    is_last=False, eps=1e-5):
    """x: [N, Cin, H, W] (NCHW, like PyTorch). w_t: [Cin, Cout, kH, kW] (ConvTranspose2d layout)."""
    # TODO(synk): only the module defaults (k=4, s=2, p=1) are specialized here; other
    # kernel/stride/padding combos and the arbitrary `upsample` nn.Module (None by default)
    # are not implemented.
    assert kernel_size == 4 and stride == 2 and padding == 1
    N, Cin, H, W = x.shape
    Cout = w_t.shape[1]
    kH = kW = kernel_size
    Hout, Wout = 2 * H, 2 * W

    # ---- Stage 1: dense matmul (no zero-dilation, no patch duplication) ----------------------
    Kl = kH * kW * Cout                       # lane dim of the matmul output (= 128 here)
    M = N * H * W
    TM = 256                                  # rows per tile; retune (512-1024) for big shapes
    Mpad = ((M + TM - 1) // TM) * TM
    Kpad = ((Cin + 15) // 16) * 16            # pad tiny contraction dim with exact zeros

    x2d = x.transpose(0, 2, 3, 1).reshape(M, Cin)                     # [M, Cin]
    w_mat = w_t.transpose(0, 2, 3, 1).reshape(Cin, Kl)                # [Cin, kh*kw*Cout]
    x2d = jnp.pad(x2d, ((0, Mpad - M), (0, Kpad - Cin))).astype(jnp.bfloat16)
    w_mat = jnp.pad(w_mat, ((0, Kpad - Cin), (0, 0))).astype(jnp.bfloat16)

    z = pl.pallas_call(
        functools.partial(_conv_matmul_kernel, apply_relu=not is_last),
        out_shape=jax.ShapeDtypeStruct((Mpad, Kl), jnp.float32),
        grid_spec=pltpu.PrefetchScalarGridSpec(
            num_scalar_prefetch=0,
            grid=(Mpad // TM,),
            in_specs=[pl.BlockSpec((TM, Kpad), lambda i: (i, 0)),
                      pl.BlockSpec((Kpad, Kl), lambda i: (0, 0))],
            out_specs=pl.BlockSpec((TM, Kl), lambda i: (i, 0))),
        compiler_params=pltpu.CompilerParams(dimension_semantics=("parallel",)),
    )(x2d, w_mat)

    # ---- Stage 2: overlap-add (col2im) for k=4, s=2, p=1 — XLA glue, dense slices+adds -------
    # Each input pixel deposits at output row oh = 2h - 1 + kh.  For output parity ph:
    #   ph=0 (oh=2m):   (h=m,  kh=1) and (h=m-1, kh=3)
    #   ph=1 (oh=2m+1): (h=m+1,kh=0) and (h=m,   kh=2)
    zr = z[:M].reshape(N, H, W, kH, kW, Cout)
    zp = jnp.pad(zr, ((0, 0), (1, 1), (1, 1), (0, 0), (0, 0), (0, 0)))
    taps = {0: ((1, 1), (0, 3)), 1: ((2, 0), (1, 2))}   # (padded slice start, kernel tap)
    parts = []
    for ph in (0, 1):
        for pw in (0, 1):
            acc = jnp.zeros((N, H, W, Cout), jnp.float32)
            for rs, kh in taps[ph]:
                for cs, kw in taps[pw]:
                    acc = acc + zp[:, rs:rs + H, cs:cs + W, kh, kw, :]
            parts.append(acc)
    y = jnp.stack(parts, axis=0).reshape(2, 2, N, H, W, Cout)
    y = y.transpose(2, 3, 0, 4, 1, 5).reshape(N, Hout, Wout, Cout)    # NHWC conv-transpose out
    y2d = y.reshape(N * Hout, Wout * Cout)                            # lane-dense view

    # ---- Stage 3: BatchNorm (two-pass) or bias (is_last), fused scale/shift -------------------
    R, Cw = N * Hout, Wout * Cout
    TR = 32
    Rpad = ((R + TR - 1) // TR) * TR
    if Rpad != R:
        y2d = jnp.pad(y2d, ((0, Rpad - R), (0, 0)))    # zero rows: do not perturb sums

    if not is_last:
        # NOTE: ConvTranspose bias is intentionally NOT added here — a per-channel constant
        # cancels exactly in training-mode BatchNorm (shifts mean by the same constant).
        s, sq = pl.pallas_call(
            _bn_stats_kernel,
            out_shape=(jax.ShapeDtypeStruct((1, Cw), jnp.float32),
                       jax.ShapeDtypeStruct((1, Cw), jnp.float32)),
            grid_spec=pltpu.PrefetchScalarGridSpec(
                num_scalar_prefetch=0,
                grid=(Rpad // TR,),
                in_specs=[pl.BlockSpec((TR, Cw), lambda i: (i, 0))],
                out_specs=[pl.BlockSpec((1, Cw), lambda i: (0, 0)),
                           pl.BlockSpec((1, Cw), lambda i: (0, 0))]),
            compiler_params=pltpu.CompilerParams(dimension_semantics=("arbitrary",)),
        )(y2d)
        cnt = float(N * Hout * Wout)
        ch_sum = s.reshape(Wout, Cout).sum(axis=0)
        ch_sq = sq.reshape(Wout, Cout).sum(axis=0)
        mean = ch_sum / cnt
        var = ch_sq / cnt - mean * mean                 # biased variance (training-mode BN)
        scale = gamma.astype(jnp.float32) * jax.lax.rsqrt(var + eps)
        shift = beta.astype(jnp.float32) - mean * scale
    else:
        scale = jnp.ones((Cout,), jnp.float32)
        shift = bias.astype(jnp.float32)

    scale_t = jnp.tile(scale, Wout).reshape(1, Cw)
    shift_t = jnp.tile(shift, Wout).reshape(1, Cw)

    out2d = pl.pallas_call(
        _scale_shift_kernel,
        out_shape=jax.ShapeDtypeStruct((Rpad, Cw), jnp.float32),
        grid_spec=pltpu.PrefetchScalarGridSpec(
            num_scalar_prefetch=0,
            grid=(Rpad // TR,),
            in_specs=[pl.BlockSpec((TR, Cw), lambda i: (i, 0)),
                      pl.BlockSpec((1, Cw), lambda i: (0, 0)),
                      pl.BlockSpec((1, Cw), lambda i: (0, 0))],
            out_specs=pl.BlockSpec((TR, Cw), lambda i: (i, 0))),
        compiler_params=pltpu.CompilerParams(dimension_semantics=("parallel",)),
    )(y2d, scale_t, shift_t)

    return out2d[:R].reshape(N, Hout, Wout, Cout).transpose(0, 3, 1, 2)   # back to NCHW


# ----------------------------- pure-JAX reference ---------------------------------------------

def reference(x, w_t, bias, gamma, beta, kernel_size=4, stride=2, padding=1, is_last=False):
    """Matches PyTorch BasicDecBlock (training-mode BN); inputs rounded to bf16 like the kernel."""
    xq = x.astype(jnp.bfloat16).astype(jnp.float32)
    wq = w_t.astype(jnp.bfloat16).astype(jnp.float32)
    h = xq if is_last else jnp.maximum(xq, 0.0)
    w_conv = jnp.flip(wq, axis=(2, 3)).transpose(1, 0, 2, 3)     # [Cout, Cin, kH, kW]
    pad = kernel_size - 1 - padding
    y = jax.lax.conv_general_dilated(
        h, w_conv, window_strides=(1, 1), padding=[(pad, pad), (pad, pad)],
        lhs_dilation=(stride, stride), dimension_numbers=('NCHW', 'OIHW', 'NCHW'),
        precision=jax.lax.Precision.HIGHEST)
    y = y + bias[None, :, None, None]
    if is_last:
        return y
    mean = y.mean(axis=(0, 2, 3), keepdims=True)
    var = jnp.square(y - mean).mean(axis=(0, 2, 3), keepdims=True)
    y = (y - mean) * jax.lax.rsqrt(var + 1e-5)
    return y * gamma[None, :, None, None] + beta[None, :, None, None]


if __name__ == "__main__":
    # Small shapes consistent with the module: inplanes=4, planes=8, 16x16 spatial, batch=2.
    N, Cin, H, W = 2, 4, 16, 16
    Cout, KSZ, STRIDE, PAD = 8, 4, 2, 1

    key = jax.random.PRNGKey(0)
    kx, kw, kb = jax.random.split(key, 3)
    x = jax.random.normal(kx, (N, Cin, H, W), jnp.float32)
    w_t = 0.1 * jax.random.normal(kw, (Cin, Cout, KSZ, KSZ), jnp.float32)   # ConvTranspose2d weight
    bias = 0.1 * jax.random.normal(kb, (Cout,), jnp.float32)                # ConvTranspose2d bias
    gamma = jnp.ones((Cout,), jnp.float32)                                  # BatchNorm2d weight init
    beta = jnp.zeros((Cout,), jnp.float32)                                  # BatchNorm2d bias init

    # Main path: ReLU -> ConvTranspose2d -> BatchNorm2d (training-mode stats).
    out = jax.block_until_ready(
        basic_dec_block(x, w_t, bias, gamma, beta, KSZ, STRIDE, PAD, is_last=False))
    assert out.shape == (N, Cout, 2 * H, 2 * W), out.shape
    ref = jax.block_until_ready(reference(x, w_t, bias, gamma, beta, KSZ, STRIDE, PAD, False))
    assert jnp.allclose(out, ref, rtol=2e-3, atol=2e-3), float(jnp.max(jnp.abs(out - ref)))

    # is_last path: ConvTranspose2d only (with bias, no ReLU/BN).
    out_l = jax.block_until_ready(
        basic_dec_block(x, w_t, bias, gamma, beta, KSZ, STRIDE, PAD, is_last=True))
    ref_l = jax.block_until_ready(reference(x, w_t, bias, gamma, beta, KSZ, STRIDE, PAD, True))
    assert jnp.allclose(out_l, ref_l, rtol=2e-3, atol=2e-3), float(jnp.max(jnp.abs(out_l - ref_l)))

    print("KERNEL_OK")
</pallas_src>

<mosaic_0001>
module attributes {stable_mosaic.version = 11 : i64} {
  func.func @_conv_matmul_kernel(%arg0: i32, %arg1: memref<256x16xbf16, #tpu.memory_space<vmem>>, %arg2: memref<16x128xbf16, #tpu.memory_space<vmem>>, %arg3: memref<256x128xf32, #tpu.memory_space<vmem>>) attributes {dimension_semantics = [#tpu.dimension_semantics<parallel>], iteration_bounds = array<i64: 2>, scalar_prefetch = 0 : i64, scratch_operands = 0 : i64, tpu.core_type = #tpu.core_type<tc>, window_params = [{transform_indices = @transform_0, window_bounds = array<i64: 256, 16>}, {pipeline_mode = #tpu.pipeline_mode<synchronous>, transform_indices = @transform_1, window_bounds = array<i64: 16, 128>}, {transform_indices = @transform_2, window_bounds = array<i64: 256, 128>}]} {
    %c0 = arith.constant 0 : index
    %c0_0 = arith.constant 0 : index
    %0 = vector.load %arg1[%c0, %c0_0] : memref<256x16xbf16, #tpu.memory_space<vmem>>, vector<256x16xbf16>
    %cst = arith.constant 0.000000e+00 : bf16
    %1 = vector.broadcast %cst : bf16 to vector<256x16xbf16>
    %2 = arith.maximumf %0, %1 : vector<256x16xbf16>
    %c0_1 = arith.constant 0 : index
    %c0_2 = arith.constant 0 : index
    %3 = vector.load %arg2[%c0_1, %c0_2] : memref<16x128xbf16, #tpu.memory_space<vmem>>, vector<16x128xbf16>
    %cst_3 = arith.constant dense<0.000000e+00> : vector<256x128xf32>
    %4 = tpu.matmul %2, %3, %cst_3 {dimension_numbers = #tpu.dot_dimension_numbers<[1], [0], [0], [1], [0, 0, 1, 1], [], []>} : vector<256x16xbf16>, vector<16x128xbf16>, vector<256x128xf32> -> vector<256x128xf32>
    %c0_4 = arith.constant 0 : index
    %c0_5 = arith.constant 0 : index
    %5 = vector.load %arg3[%c0_4, %c0_5] : memref<256x128xf32, #tpu.memory_space<vmem>>, vector<256x128xf32>
    tpu.vector_store %arg3[%c0_4, %c0_5], %4 {strides = array<i32>} : memref<256x128xf32, #tpu.memory_space<vmem>>, vector<256x128xf32>,
    return
  }
  func.func @transform_0(%arg0: i32) -> (i32, i32) {
    %c0_i32 = arith.constant 0 : i32
    %c0_i32_0 = arith.constant 0 : i32
    return %arg0, %c0_i32 : i32, i32
  }
  func.func @transform_1(%arg0: i32) -> (i32, i32) {
    %c0_i32 = arith.constant 0 : i32
    %c0_i32_0 = arith.constant 0 : i32
    %c0_i32_1 = arith.constant 0 : i32
    return %c0_i32, %c0_i32_0 : i32, i32
  }
  func.func @transform_2(%arg0: i32) -> (i32, i32) {
    %c0_i32 = arith.constant 0 : i32
    %c0_i32_0 = arith.constant 0 : i32
    return %arg0, %c0_i32 : i32, i32
  }
}

</mosaic_0001>

<bundles_post_ra>
// kernel: tpu_custom_call.1
= control target key start
LH: loop header
LB: loop body
LE: loop exit
PB: predicated region body
PF: predicated region fallthrough
CT: control target
= control target key end

     0   :  { %7 = vsyncpa [#allocation3], 0  ;;  %s1064_s0 = inlined_call_operand.vmem [shape: bf16[512,16], index: 0, kind: input, shape index: {}]   ;;  %s1065_s1 = inlined_call_operand.vmem [shape: bf16[16,128], index: 1, kind: input, shape index: {}]   ;;  %s1066_s2 = inlined_call_operand.hbm [shape: f32[512,128], index: 2, kind: output, shape index: {}]  }
   0x1   :  { %9 = vsyncpa [#allocation3 + $0x1], 0  ;;  %s839_s9 = smov 0   ;;  %s841_s10 = smov 0  }
   0x2   :  { %s843_s11 = smov 0   ;;  %s845_s12 = smov 0  }
   0x3 LB: > { %s860_s13 = sadd.s32 4294967295, %s818_s12   ;;  %s616_s14 = sadd.s32 4294967294, %s818_s12   ;;  %s818_s12 = sphi %s845_s12, %s1072_s12   ;;  %s814_s11 = sphi %s843_s11, %s1071_s11   ;;  %s810_s10 = sphi %s841_s10, %s1070_s10   ;;  %s806_s9 = sphi %s839_s9, %s1069_s9  }
   0x4   : > { %s864_s15 = sadd.s32 1, %s818_s12   ;;  %s69_s16 = sadd.s32 1, %s814_s11 }
   0x5   : > { %s66_s17 = ssub.s32 %s818_s12, %s864_s15  ;;  %p79_p0 = scmp.ne.s32.totalorder %s814_s11, %s810_s10 }
   0x6   : > { %p67_p1 = scmp.eq.s32.totalorder %s66_s17, 0  ;;  %p80_p2 = scmp.eq.s32.totalorder %s860_s13, 1 }
   0x7   : > { %p85_p3 = scmp.ne.s32.totalorder %s810_s10, %s806_s9  ;;  %p86_p4 = scmp.eq.s32.totalorder %s616_s14, 1 }
   0x8   : > { %s875_s18 = scalar_select %p67_p1, %s814_s11, %s69_s16  }
   0x9   : > { %p877_p5 = por %p80_p2, %p79_p0  ;;  %p881_p6 = por %p86_p4, %p85_p3 }
   0xa   : > { %p619_p7 = scmp.ge.s32.totalorder %s818_s12, 1  ;;  %p116_p8 = scmp.lt.s32.totalorder %s818_s12, 3 }
   0xc   : > { %p117_p9 = pnand %p619_p7, %p116_p8 }
   0xd   : > { %s621_s23 = sshll.u32 (!%p117_p9), %s860_s13, 5  ;;  %s135_s28 = sand.u32 (!%p117_p9), 1, %s810_s10  }
   0xe   : > { %120 = sbr.rel (%p117_p9) target bundleno = 266 (0x10a), region = 28  ;;  %p139_p10 = scmp.lt.s32.totalorder (!%p117_p9), %s621_s23, 63 }
   0xf   : > { %s620_s29 = sshll.u32 (!%p117_p9), %s135_s28, 8  ;;  %s661_s3 = sshll.u32 (!%p117_p9), %s860_s13, 12 }
  0x10   : > { %s979_s30 = scalar_lea.vmem (!%p117_p9), [#allocation2], %s620_s29  ;;  %s1015_s7 = scalar_lea.hbm (!%p117_p9), %s1066_s2, %s661_s3 }
  0x11   : > { %s554_s4 = sshll.u32 (!%p117_p9), %s979_s30, 4  ;;  %s1024_s8 = scalar_lea.sflag (!%p117_p9), [#allocation3], %s135_s28  ;;  %s1017_s4 = int_to_ptr.vmem [resolvable:$true] %s554_s4 }
  0x12   : > { %s758_s13 = scalar_lea.vmem (!%p117_p9), %s1017_s4, 4096  ;;  %s821_s14 = smov (!%p117_p9), [#allocation2]  }
  0x13   : > { %v757_v0 = vld [vmem:[%s1065_s1] sm:$0xff]   ;;  %s1074_s23 = smov (!%p139_p10, %s621_s23), 63  ;;  %vm298_vm0 = vcmask 130048   ;;  %v820_v4 = vmov 0   ;;  %p759_p11 = scmp.ne.s32.totalorder %s1017_s4, %s758_s13 }
  0x14   : > { %679 = vmatprep.subr.bf16.mxu0 %v757_v0  ;;  %713 = vmatprep.subr.bf16.mxu1 %v757_v0  ;;  %s622_s24 = sshll.u32 %s1074_s23, 2  ;;  %s762_s16 = sshll.u32 %s821_s14, 4  ;;  %s763_s16 = int_to_ptr.vmem [resolvable:$false] %s762_s16 }
  0x15   : > { %680 = vmatpush3.bf16.msra.mxu0 %v757_v0  ;;  %714 = vmatpush3.bf16.msra.mxu1 %v757_v0  ;;  %s894_s27 = scalar_lea.vmem %s1064_s0, %s622_s24  ;;  %p760_p12 = pnand %p759_p11, %p877_p5 }
  0x16   : > { %v146_v1 = vld [vmem:[%s894_s27] sm:$0xf]  ;;  %v147_v2 = vld [vmem:[%s894_s27 + $0x4] sm:$0xf]  ;;  %v148_v9 = vld [vmem:[%s894_s27 + $0x8] sm:$0xf]  ;;  %p765_p0 = scmp.lt.s32.totalorder %s1017_s4, %s763_s16 }
  0x17   : > { %v162_v3 = vld [vmem:[%s894_s27 + $0x40] sm:$0xf]  ;;  %v178_v5 = vmax.bf16 %v820_v4, %v146_v1  ;;  %v179_v6 = vmax.bf16 %v820_v4, %v147_v2  ;;  %v163_v7 = vld [vmem:[%s894_s27 + $0x44] sm:$0xf]  ;;  %v149_v10 = vld [vmem:[%s894_s27 + $0xc] sm:$0xf]  ;;  %v180_v12 = vmax.bf16 %v820_v4, %v148_v9  ;;  %p761_p13 = pneg %p760_p12 }
  0x18   : > { %v194_v8 = vmax.bf16 %v820_v4, %v162_v3  ;;  %v195_v11 = vmax.bf16 %v820_v4, %v163_v7  ;;  %v181_v13 = vmax.bf16 %v820_v4, %v149_v10  ;;  %v164_v14 = vld [vmem:[%s894_s27 + $0x48] sm:$0xf]  ;;  %v165_v15 = vld [vmem:[%s894_s27 + $0x4c] sm:$0xf]  ;;  %v150_v16 = vld [vmem:[%s894_s27 + $0x10] sm:$0xf] }
  0x19   : > { %v623_v17 = vcombine.low %v178_v5, %v179_v6  ;;  %v196_v18 = vmax.bf16 %v820_v4, %v164_v14  ;;  %v197_v19 = vmax.bf16 %v820_v4, %v165_v15  ;;  %v151_v20 = vld [vmem:[%s894_s27 + $0x14] sm:$0xf]  ;;  %v182_v21 = vmax.bf16 %v820_v4, %v150_v16  ;;  %v166_v22 = vld [vmem:[%s894_s27 + $0x50] sm:$0xf]  ;;  %v152_v28 = vld [vmem:[%s894_s27 + $0x18] sm:$0xf] }
  0x1a   : > { %v167_v23 = vld [vmem:[%s894_s27 + $0x54] sm:$0xf]  ;;  %v631_v24 = vcombine.low %v194_v8, %v195_v11  ;;  %v624_v25 = vcombine.low %v180_v12, %v181_v13  ;;  %v183_v26 = vmax.bf16 %v820_v4, %v151_v20  ;;  %v198_v27 = vmax.bf16 %v820_v4, %v166_v22  ;;  %v153_v29 = vld [vmem:[%s894_s27 + $0x1c] sm:$0xf]  ;;  %v168_v30 = vld [vmem:[%s894_s27 + $0x58] sm:$0xf] }
  0x1b   : > { %681 = vmatprep.mubr.msk.bf16.mxu0 %vm298_vm0, %v623_v17  ;;  %v632_v31 = vcombine.low %v196_v18, %v197_v19  ;;  %v199_v32 = vmax.bf16 %v820_v4, %v167_v23  ;;  %v184_v33 = vmax.bf16 %v820_v4, %v152_v28  ;;  %v169_v34 = vld [vmem:[%s894_s27 + $0x5c] sm:$0xf]  ;;  %v154_v35 = vld [vmem:[%s894_s27 + $0x20] sm:$0xf]  ;;  %v155_v36 = vld [vmem:[%s894_s27 + $0x24] sm:$0xf]  ;;  %v185_v38 = vmax.bf16 %v820_v4, %v153_v29 }
  0x1c   : > { %697 = vmatprep.mubr.msk.bf16.mxu1 %vm298_vm0, %v631_v24  ;;  %682 = vmatmul.mubr.msk.bf16.vlgmr.msra.gmra.mxu0 %vm298_vm0, %v624_v25  ;;  %v625_v37 = vcombine.low %v182_v21, %v183_v26  ;;  %v200_v39 = vmax.bf16 %v820_v4, %v168_v30  ;;  %v170_v40 = vld [vmem:[%s894_s27 + $0x60] sm:$0xf]  ;;  %v171_v41 = vld [vmem:[%s894_s27 + $0x64] sm:$0xf]  ;;  %v201_v43 = vmax.bf16 %v820_v4, %v169_v34  ;;  %v156_v51 = vld [vmem:[%s894_s27 + $0x28] sm:$0xf] }
  0x1d   : > { %698 = vmatmul.mubr.msk.bf16.vlgmr.msra.gmra.mxu1 %vm298_vm0, %v632_v31  ;;  %v633_v42 = vcombine.low %v198_v27, %v199_v32  ;;  %v186_v44 = vmax.bf16 %v820_v4, %v154_v35  ;;  %v187_v45 = vmax.bf16 %v820_v4, %v155_v36  ;;  %v202_v46 = vmax.bf16 %v820_v4, %v170_v40  ;;  %v157_v52 = vld [vmem:[%s894_s27 + $0x2c] sm:$0xf]  ;;  %v172_v53 = vld [vmem:[%s894_s27 + $0x68] sm:$0xf]  ;;  %v158_v56 = vld [vmem:[%s894_s27 + $0x30] sm:$0xf] }
  0x1e   : > { %685 = vmatprep.mubr.msk.bf16.mxu0 %vm298_vm0, %v625_v37  ;;  %v203_v47 = vmax.bf16 %v820_v4, %v171_v41  ;;  %v626_v48 = vcombine.low %v184_v33, %v185_v38  ;;  %v634_v49 = vcombine.low %v200_v39, %v201_v43  ;;  %v173_v55 = vld [vmem:[%s894_s27 + $0x6c] sm:$0xf]  ;;  %v159_v57 = vld [vmem:[%s894_s27 + $0x34] sm:$0xf]  ;;  %v174_v58 = vld [vmem:[%s894_s27 + $0x70] sm:$0xf]  ;;  %v188_v60 = vmax.bf16 %v820_v4, %v156_v51 }
  0x1f   : > { %701 = vmatprep.mubr.msk.bf16.mxu1 %vm298_vm0, %v633_v42  ;;  %v627_v50 = vcombine.low %v186_v44, %v187_v45  ;;  %v175_v59 = vld [vmem:[%s894_s27 + $0x74] sm:$0xf]  ;;  %v189_v61 = vmax.bf16 %v820_v4, %v157_v52  ;;  %v204_v62 = vmax.bf16 %v820_v4, %v172_v53  ;;  %v205_v63 = vmax.bf16 %v820_v4, %v173_v55  ;;  %v160_v8 = vld [vmem:[%s894_s27 + $0x38] sm:$0xf]  ;;  %v161_v9 = vld [vmem:[%s894_s27 + $0x3c] sm:$0xf] }
  0x20   : > { %v635_v54 = vcombine.low %v202_v46, %v203_v47  ;;  %v190_v0 = vmax.bf16 %v820_v4, %v158_v56  ;;  %v191_v1 = vmax.bf16 %v820_v4, %v159_v57  ;;  %v206_v2 = vmax.bf16 %v820_v4, %v174_v58  ;;  %v176_v11 = vld [vmem:[%s894_s27 + $0x78] sm:$0xf]  ;;  %v177_v12 = vld [vmem:[%s894_s27 + $0x7c] sm:$0xf]  ;;  %s764_s17 = scalar_lea.vmem %s763_s16, 8192 }
  0x21   : > { %v207_v3 = vmax.bf16 %v820_v4, %v175_v59  ;;  %v628_v5 = vcombine.low %v188_v60, %v189_v61  ;;  %v636_v6 = vcombine.low %v204_v62, %v205_v63  ;;  %v192_v13 = vmax.bf16 %v820_v4, %v160_v8  ;;  %p766_p1 = scmp.lt.s32.totalorder %s764_s17, %s758_s13 }
  0x22   : > { %v629_v7 = vcombine.low %v190_v0, %v191_v1  ;;  %v193_v14 = vmax.bf16 %v820_v4, %v161_v9  ;;  %v208_v15 = vmax.bf16 %v820_v4, %v176_v11  ;;  %v209_v16 = vmax.bf16 %v820_v4, %v177_v12 }
  0x23   : > { %v637_v10 = vcombine.low %v206_v2, %v207_v3  ;;  %p767_p2 = por %p766_p1, %p765_p0 }
  0x24   : > { %686 = vmatmul.mubr.msk.bf16.gmra.mxu0 %vm298_vm0, %v626_v48  ;;  %v630_v17 = vcombine.low %v192_v13, %v193_v14  ;;  %v638_v18 = vcombine.low %v208_v15, %v209_v16 }
  0x25   : > { %702 = vmatmul.mubr.msk.bf16.gmra.mxu1 %vm298_vm0, %v634_v49  ;;  %689 = vmatprep.mubr.msk.bf16.mxu0 %vm298_vm0, %v627_v50  ;;  %p768_p3 = pnand %p767_p2, %p761_p13 }
  0x26   : > { %705 = vmatprep.mubr.msk.bf16.mxu1 %vm298_vm0, %v635_v54 }
  0x2c   : > { %690 = vmatmul.mubr.msk.bf16.gmra.mxu0 %vm298_vm0, %v628_v5 }
  0x2d   : > { %706 = vmatmul.mubr.msk.bf16.gmra.mxu1 %vm298_vm0, %v636_v6  ;;  %693 = vmatprep.mubr.msk.bf16.mxu0 %vm298_vm0, %v629_v7 }
  0x2e   : > { %709 = vmatprep.mubr.msk.bf16.mxu1 %vm298_vm0, %v637_v10 }
  0x34   : > { %694 = vmatmul.mubr.msk.bf16.gmra.mxu0 %vm298_vm0, %v630_v17 }
  0x35   : > { %710 = vmatmul.mubr.msk.bf16.gmra.mxu1 %vm298_vm0, %v638_v18 }
  0xdc   : > { %v683_v19 = vpop.f32.mrf.mxu0 }
  0xdd   : > { %510 = vst [vmem:[%s979_s30 + $0x10] sm:$0xff] %v683_v19  ;;  %v699_v4 = vpop.f32.mrf.mxu1 }
  0xde   : > { %526 = vst [vmem:[%s979_s30 + $0x90] sm:$0xff] %v699_v4  ;;  %v381_v20 = vpop.f32.mrf.mxu0 }
  0xdf   : > { %508 = vst [vmem:[%s979_s30] sm:$0xff] %v381_v20  ;;  %v445_v21 = vpop.f32.mrf.mxu1 }
  0xe0   : > { %524 = vst [vmem:[%s979_s30 + $0x80] sm:$0xff] %v445_v21  ;;  %v684_v22 = vpop.f32.mrf.mxu0 }
  0xe1   : > { %511 = vst [vmem:[%s979_s30 + $0x18] sm:$0xff] %v684_v22  ;;  %v700_v23 = vpop.f32.mrf.mxu1 }
  0xe2   : > { %527 = vst [vmem:[%s979_s30 + $0x98] sm:$0xff] %v700_v23  ;;  %v384_v24 = vpop.f32.mrf.mxu0 }
  0xe3   : > { %509 = vst [vmem:[%s979_s30 + $0x8] sm:$0xff] %v384_v24  ;;  %v448_v25 = vpop.f32.mrf.mxu1 }
  0xe4   : > { %525 = vst [vmem:[%s979_s30 + $0x88] sm:$0xff] %v448_v25  ;;  %v687_v26 = vpop.f32.mrf.mxu0 }
  0xe5   : > { %514 = vst [vmem:[%s979_s30 + $0x30] sm:$0xff] %v687_v26  ;;  %v703_v27 = vpop.f32.mrf.mxu1 }
  0xe6   : > { %530 = vst [vmem:[%s979_s30 + $0xb0] sm:$0xff] %v703_v27  ;;  %v397_v28 = vpop.f32.mrf.mxu0 }
  0xe7   : > { %512 = vst [vmem:[%s979_s30 + $0x20] sm:$0xff] %v397_v28  ;;  %v461_v29 = vpop.f32.mrf.mxu1 }
  0xe8   : > { %528 = vst [vmem:[%s979_s30 + $0xa0] sm:$0xff] %v461_v29  ;;  %v688_v30 = vpop.f32.mrf.mxu0 }
  0xe9   : > { %515 = vst [vmem:[%s979_s30 + $0x38] sm:$0xff] %v688_v30  ;;  %v704_v31 = vpop.f32.mrf.mxu1 }
  0xea   : > { %531 = vst [vmem:[%s979_s30 + $0xb8] sm:$0xff] %v704_v31  ;;  %v400_v32 = vpop.f32.mrf.mxu0 }
  0xeb   : > { %513 = vst [vmem:[%s979_s30 + $0x28] sm:$0xff] %v400_v32  ;;  %v464_v33 = vpop.f32.mrf.mxu1 }
  0xec   : > { %529 = vst [vmem:[%s979_s30 + $0xa8] sm:$0xff] %v464_v33  ;;  %v691_v34 = vpop.f32.mrf.mxu0 }
  0xed   : > { %518 = vst [vmem:[%s979_s30 + $0x50] sm:$0xff] %v691_v34  ;;  %v707_v35 = vpop.f32.mrf.mxu1 }
  0xee   : > { %534 = vst [vmem:[%s979_s30 + $0xd0] sm:$0xff] %v707_v35  ;;  %v413_v36 = vpop.f32.mrf.mxu0 }
  0xef   : > { %516 = vst [vmem:[%s979_s30 + $0x40] sm:$0xff] %v413_v36  ;;  %v477_v37 = vpop.f32.mrf.mxu1 }
  0xf0   : > { %532 = vst [vmem:[%s979_s30 + $0xc0] sm:$0xff] %v477_v37  ;;  %v692_v38 = vpop.f32.mrf.mxu0 }
  0xf1   : > { %519 = vst [vmem:[%s979_s30 + $0x58] sm:$0xff] %v692_v38  ;;  %v708_v39 = vpop.f32.mrf.mxu1 }
  0xf2   : > { %535 = vst [vmem:[%s979_s30 + $0xd8] sm:$0xff] %v708_v39  ;;  %v416_v40 = vpop.f32.mrf.mxu0 }
  0xf3   : > { %517 = vst [vmem:[%s979_s30 + $0x48] sm:$0xff] %v416_v40  ;;  %v480_v41 = vpop.f32.mrf.mxu1 }
  0xf4   : > { %533 = vst [vmem:[%s979_s30 + $0xc8] sm:$0xff] %v480_v41  ;;  %v695_v42 = vpop.f32.mrf.mxu0 }
  0xf5   : > { %522 = vst [vmem:[%s979_s30 + $0x70] sm:$0xff] %v695_v42  ;;  %v711_v43 = vpop.f32.mrf.mxu1 }
  0xf6   : > { %538 = vst [vmem:[%s979_s30 + $0xf0] sm:$0xff] %v711_v43  ;;  %v429_v44 = vpop.f32.mrf.mxu0 }
  0xf7   : > { %520 = vst [vmem:[%s979_s30 + $0x60] sm:$0xff] %v429_v44  ;;  %v493_v45 = vpop.f32.mrf.mxu1 }
  0xf8   : > { %536 = vst [vmem:[%s979_s30 + $0xe0] sm:$0xff] %v493_v45  ;;  %v696_v46 = vpop.f32.mrf.mxu0 }
  0xf9   : > { %523 = vst [vmem:[%s979_s30 + $0x78] sm:$0xff] %v696_v46  ;;  %v712_v47 = vpop.f32.mrf.mxu1 }
  0xfa   : > { %539 = vst [vmem:[%s979_s30 + $0xf8] sm:$0xff] %v712_v47  ;;  %v432_v48 = vpop.f32.mrf.mxu0 }
  0xfb   : > { %521 = vst [vmem:[%s979_s30 + $0x68] sm:$0xff] %v432_v48  ;;  %v496_v49 = vpop.f32.mrf.mxu1 }
  0xfc   : > { %537 = vst [vmem:[%s979_s30 + $0xe8] sm:$0xff] %v496_v49 }
  0xfd   : > { %771 = shalt.err (!%p768_p3)
}
  0xfe   : > { %s772_s21 = scalar_lea.hbm %s1015_s7, 4096  ;;  %s776_s24 = scalar_lea.hbm %s1066_s2, 8192 }
  0xff   : > { %p773_p4 = scmp.ne.s32.totalorder %s1015_s7, %s772_s21  ;;  %p777_p9 = scmp.lt.s32.totalorder %s1015_s7, %s1066_s2 }
 0x100   : > { %p778_p10 = scmp.lt.s32.totalorder %s776_s24, %s772_s21 }
 0x101   : > { %p774_p7 = pnand %p773_p4, %p877_p5 }
 0x102   : > { %p779_p11 = por %p778_p10, %p777_p9 }
 0x103   : > { %p775_p8 = pneg %p774_p7 }
 0x105   : > { %p780_p12 = pnand %p779_p11, %p775_p8 }
 0x107   : > { %783 = shalt.err (!%p780_p12)
}
 0x108   : > { %s822_s27 = smov 128   ;;  %s823_s28 = smov 8  }
 0x109   : > { %715 = dma.vmem_to_hbm [thread:$0]  (%p877_p5), %s1017_s4, 4096, %s1015_s7, %s1024_s8, %s822_s27, %s822_s27, %s823_s28  }
 0x10a PF: > { %p721_p13 = scmp.ge.s32.totalorder %s818_s12, 2  ;;  %s569_s29 = sand.u32 1, %s806_s9  }
 0x10b   : > { %s570_s30 = scalar_lea.sflag [#allocation3], %s569_s29 }
 0x10c   : > { %p718_p0 = pnand %p721_p13, %p881_p6 }
 0x10e   : > { %p719_p1 = pneg %p718_p0 }
 0x110   : > { %801 = dma.done.wait (%p719_p1), %s570_s30, 4096  }
 0x111   : > { %803 = vsyncadd (%p719_p1), %s570_s30, 4294963200  ;;  %p12_p2 = scmp.ge.s32.totalorder %s864_s15, 4   ;;  %s1069_s9 = smov %s810_s10 }
 0x112   : > { %s1070_s10 = smov %s814_s11  ;;  %s1071_s11 = smov %s875_s18 }
 0x113   : > { %s1072_s12 = smov %s864_s15  ;;  %14 = sbr.rel (!%p12_p2) target bundleno = 3 (0x3), region = 63 }
 0x118   :  { %575 = vsyncpa [#allocation3], 1 }
 0x119   :  { %577 = vsyncpa [#allocation3 + $0x1], 1 }

</bundles_post_ra>
